<compile_context>
chip_gen: v7x
topology: tpu7x:2x2x1
jax: 0.10.0
libtpu: 0.0.40
codegen_flags: <defaults>
</compile_context>

<pallas_src>
import functools

import jax
import jax.numpy as jnp
from jax.experimental import pallas as pl
from jax.experimental.pallas import tpu as pltpu


def _pow_no_translog(base, gamma):
    """base**gamma without the exp/log lowering when gamma is a small integer."""
    g = float(gamma)
    if g == round(g) and 0.0 <= g <= 8.0:
        gi = int(round(g))
        if gi == 0:
            return jnp.ones_like(base)
        out = base
        for _ in range(gi - 1):
            out = out * base
        return out
    return jnp.power(base, g)


def _loss_sums_kernel(gamma, n_rows, block_rows, has_tail,
                      x_ref, t_ref, out_ref):
    """Writes per-block, per-lane partial sums.

    out_ref: VMEM f32[1, 4, n_cols] for the current row-block:
      [0] sum(focal/alpha)  [1] sum(bce)  [2] sum(bce * t)  [3] sum(t)
    """
    x = x_ref[...].astype(jnp.float32)
    t = t_ref[...].astype(jnp.float32)

    if has_tail:
        # Rows beyond n_rows in the last block hold garbage from HBM padding;
        # zero them so no NaN/Inf can leak, then mask their contributions.
        row0 = pl.program_id(0) * block_rows
        rows = jax.lax.broadcasted_iota(jnp.int32, x.shape, 0) + row0
        valid = rows < n_rows
        x = jnp.where(valid, x, 0.0)
        t = jnp.where(valid, t, 0.0)
        vf = valid.astype(jnp.float32)

    # Stable BCE-with-logits.  e = exp(-|x|) is the only full-rate exp; it is
    # reused below to rebuild pt (saves a second exp per element).
    e = jnp.exp(-jnp.abs(x))
    bce = jnp.maximum(x, 0.0) - x * t + jnp.log1p(e)

    # pt = exp(-bce) = exp(x*t - max(x,0)) / (1 + e).  For binary targets the
    # numerator is 1 when the sign of x "matches" t, else e; (t-0.5)*x > 0
    # encodes that match with pure float compares (x == 0 gives e == 1 either way).
    num = jnp.where((t - 0.5) * x > 0.0, 1.0, e)
    d = 1.0 + e                                   # d in [1, 2]: well conditioned
    rinv = pl.reciprocal(d, approx=True)          # EUP vrcp, separate bundle slot
    rinv = rinv * (2.0 - d * rinv)                # one Newton step -> full f32 prec
    pt = num * rinv

    focal = _pow_no_translog(1.0 - pt, gamma) * bce   # alpha applied on the host

    if has_tail:
        focal_s = focal * vf
        bce_s = bce * vf
    else:
        focal_s = focal
        bce_s = bce

    # Sublane-only reductions; the cross-lane reduce happens on the host.
    out_ref[0, 0, :] = jnp.sum(focal_s, axis=0)
    out_ref[0, 1, :] = jnp.sum(bce_s, axis=0)
    out_ref[0, 2, :] = jnp.sum(bce * t, axis=0)   # t already zeroed for pad rows
    out_ref[0, 3, :] = jnp.sum(t, axis=0)


def _pick_block_rows(n_rows, n_cols, itemsize, requested=None,
                     target_block_bytes=2 * 1024 * 1024,
                     vmem_budget_bytes=12 * 1024 * 1024):
    """Row-block size: ~2 MiB per input, >= ~8 grid steps when possible, and
    2 inputs x 2 pipeline buffers kept under the VMEM budget."""
    if requested is not None:
        br = int(requested)
    else:
        row_bytes = max(n_cols * itemsize, 1)
        cap_vmem = max(8, (vmem_budget_bytes // (row_bytes * 4)) // 8 * 8)
        cap_tgt = max(8, (target_block_bytes // row_bytes) // 8 * 8)
        rows_for_8_steps = -(-n_rows // 8)                 # cdiv(n_rows, 8)
        rows_for_8_steps = -(-rows_for_8_steps // 8) * 8   # round up to mult of 8
        br = min(cap_vmem, cap_tgt, max(256, rows_for_8_steps))
        br = max(br, 8)
    if br >= n_rows:
        return n_rows
    return max(8, (br // 8) * 8)


def _combine(loss1, loss2, loss3, fw, bw, nw, adaptively_rescale_losses):
    if adaptively_rescale_losses:
        # torch uses .detach().item() — mirrored with stop_gradient, on-device.
        l1 = jax.lax.stop_gradient(loss1)
        l2 = jax.lax.stop_gradient(loss2)
        l3 = jax.lax.stop_gradient(loss3)
        tot = l1 + l2 + l3
        w1 = tot / (l1 + 1e-6) * fw
        w2 = tot / (l2 + 1e-6) * bw
        w3 = tot / (l3 + 1e-6) * nw
    else:
        w1, w2, w3 = fw, bw, nw
    return w1 * loss1 + w2 * loss2 + w3 * loss3


def _loss_terms_jax(x, t, alpha, gamma):
    """Pure-JAX fallback (tiny inputs / pathologically wide label dims)."""
    x = x.astype(jnp.float32)
    t = t.astype(jnp.float32)
    e = jnp.exp(-jnp.abs(x))
    bce = jnp.maximum(x, 0.0) - x * t + jnp.log1p(e)
    pt = jnp.exp(-bce)
    loss1 = jnp.mean(alpha * _pow_no_translog(1.0 - pt, gamma) * bce)
    loss2 = jnp.mean(bce)
    n = jnp.float32(x.size)
    pos_cnt = jnp.sum(t)
    pos_sum = jnp.sum(bce * t)
    neg_sum = jnp.sum(bce) - pos_sum
    neg_cnt = n - pos_cnt
    pos_mean = jnp.where(pos_cnt > 0, pos_sum / jnp.maximum(pos_cnt, 1.0), 0.0)
    neg_mean = jnp.where(neg_cnt > 0, neg_sum / jnp.maximum(neg_cnt, 1.0), 0.0)
    loss3 = 0.5 * (pos_mean + neg_mean)
    return loss1, loss2, loss3


def focal_bce_npbbce_loss(output, target, *, alpha=0.25, gamma=2.0,
                          focal_weight=1.0, bce_weight=1.0, npbbce_weight=1.0,
                          adaptively_rescale_losses=True, block_rows=None,
                          min_pallas_elements=65536):
    assert output.shape == target.shape
    tot_w = focal_weight + bce_weight + npbbce_weight
    fw, bw, nw = focal_weight / tot_w, bce_weight / tot_w, npbbce_weight / tot_w

    # Flatten to (rows, labels): labels on the lane axis, everything else on rows.
    if output.ndim > 1:
        x2 = output.reshape(-1, output.shape[-1])
    else:
        x2 = output.reshape(1, -1)
    t2 = target.reshape(x2.shape)
    n_rows, n_cols = x2.shape

    # Tiny inputs, or a label dim so wide that even an 8-row double-buffered
    # block blows VMEM: let XLA fuse the elementwise+reduce instead.
    # TODO(synk): add a column-tiled kernel variant for extremely wide label dims.
    min_block_bytes = n_cols * x2.dtype.itemsize * 8 * 4
    if x2.size < min_pallas_elements or min_block_bytes > 16 * 1024 * 1024:
        l1, l2, l3 = _loss_terms_jax(x2, t2, alpha, gamma)
        return _combine(l1, l2, l3, fw, bw, nw, adaptively_rescale_losses)

    br = _pick_block_rows(n_rows, n_cols, x2.dtype.itemsize, requested=block_rows)
    nb = pl.cdiv(n_rows, br)
    has_tail = (n_rows % br) != 0

    partials = pl.pallas_call(
        functools.partial(_loss_sums_kernel, float(gamma), n_rows, br, has_tail),
        grid=(nb,),
        out_shape=jax.ShapeDtypeStruct((nb, 4, n_cols), jnp.float32),
        in_specs=[
            pl.BlockSpec((br, n_cols), lambda i: (i, 0)),
            pl.BlockSpec((br, n_cols), lambda i: (i, 0)),
        ],
        out_specs=pl.BlockSpec((1, 4, n_cols), lambda i: (i, 0, 0)),
        compiler_params=pltpu.CompilerParams(
            dimension_semantics=("parallel",),      # per-block outputs -> shardable
            vmem_limit_bytes=32 * 1024 * 1024),
    )(x2, t2)

    sums = jnp.sum(partials, axis=(0, 2))           # (4,) host-side final reduce
    n = jnp.float32(x2.size)
    focal_sum = alpha * sums[0]                     # alpha hoisted out of the kernel
    bce_sum = sums[1]
    pos_bce_sum = sums[2]
    pos_cnt = sums[3]
    neg_bce_sum = bce_sum - pos_bce_sum             # binary targets {0,1}
    neg_cnt = n - pos_cnt

    loss1 = focal_sum / n                           # FocalLoss (mean)
    loss2 = bce_sum / n                             # BCEWithLogitsLoss (mean)
    pos_mean = jnp.where(pos_cnt > 0, pos_bce_sum / jnp.maximum(pos_cnt, 1.0), 0.0)
    neg_mean = jnp.where(neg_cnt > 0, neg_bce_sum / jnp.maximum(neg_cnt, 1.0), 0.0)
    loss3 = 0.5 * (pos_mean + neg_mean)             # NegativePositiveBalancedBCELoss

    return _combine(loss1, loss2, loss3, fw, bw, nw, adaptively_rescale_losses)


if __name__ == "__main__":
    key = jax.random.PRNGKey(0)
    k1, k2, k3, k4 = jax.random.split(key, 4)

    def reference(logits, targets):
        # Pure-JAX reference with the original (exp(-bce), pow, ==-masks) form.
        bce = (jnp.maximum(logits, 0.0) - logits * targets
               + jnp.log1p(jnp.exp(-jnp.abs(logits))))
        pt = jnp.exp(-bce)
        l1 = jnp.mean(0.25 * (1.0 - pt) ** 2 * bce)
        l2 = jnp.mean(bce)
        pos = (targets == 1.0).astype(jnp.float32)
        neg = (targets == 0.0).astype(jnp.float32)
        pos_m = jnp.where(jnp.sum(pos) > 0,
                          jnp.sum(bce * pos) / jnp.maximum(jnp.sum(pos), 1.0), 0.0)
        neg_m = jnp.where(jnp.sum(neg) > 0,
                          jnp.sum(bce * neg) / jnp.maximum(jnp.sum(neg), 1.0), 0.0)
        l3 = 0.5 * (pos_m + neg_m)
        tot = l1 + l2 + l3
        return (tot / (l1 + 1e-6) / 3.0) * l1 + (tot / (l2 + 1e-6) / 3.0) * l2 \
            + (tot / (l3 + 1e-6) / 3.0) * l3

    # Case 1: nominal shape [batch=8, num_labels=128]; force the Pallas path
    # (single block, no tail).
    B, L = 8, 128
    logits = jax.random.normal(k1, (B, L), dtype=jnp.float32) * 2.0
    targets = jax.random.bernoulli(k2, p=0.3, shape=(B, L)).astype(jnp.float32)
    loss = jax.jit(functools.partial(focal_bce_npbbce_loss,
                                     min_pallas_elements=0))(logits, targets)
    jax.block_until_ready(loss)
    ref = reference(logits, targets)
    assert jnp.allclose(loss, ref, rtol=1e-4, atol=1e-5), (loss, ref)

    # Case 2: non-divisible row count with forced 64-row blocks -> exercises the
    # cdiv grid + in-kernel tail mask + per-block partials + "parallel" axis
    # (grid = (10,), last block has 24 valid rows).
    B2, L2 = 600, 128
    logits2 = jax.random.normal(k3, (B2, L2), dtype=jnp.float32) * 2.0
    targets2 = jax.random.bernoulli(k4, p=0.3, shape=(B2, L2)).astype(jnp.float32)
    loss2 = jax.jit(functools.partial(focal_bce_npbbce_loss,
                                      block_rows=64, min_pallas_elements=0))(
        logits2, targets2)
    jax.block_until_ready(loss2)
    ref2 = reference(logits2, targets2)
    assert jnp.allclose(loss2, ref2, rtol=1e-4, atol=1e-5), (loss2, ref2)

    print("KERNEL_OK")
</pallas_src>

<mosaic_0001>
module attributes {stable_mosaic.version = 11 : i64} {
  func.func @_loss_sums_kernel(%arg0: i32, %arg1: memref<8x128xf32, #tpu.memory_space<vmem>>, %arg2: memref<8x128xf32, #tpu.memory_space<vmem>>, %arg3: memref<1x4x128xf32, #tpu.memory_space<vmem>>) attributes {dimension_semantics = [#tpu.dimension_semantics<parallel>], iteration_bounds = array<i64: 1>, scalar_prefetch = 0 : i64, scratch_operands = 0 : i64, tpu.core_type = #tpu.core_type<tc>, window_params = [{transform_indices = @transform_0, window_bounds = array<i64: 8, 128>}, {transform_indices = @transform_1, window_bounds = array<i64: 8, 128>}, {transform_indices = @transform_2, window_bounds = array<i64: 1, 4, 128>}]} {
    %c0 = arith.constant 0 : index
    %c0_0 = arith.constant 0 : index
    %0 = vector.load %arg1[%c0, %c0_0] : memref<8x128xf32, #tpu.memory_space<vmem>>, vector<8x128xf32>
    %c0_1 = arith.constant 0 : index
    %c0_2 = arith.constant 0 : index
    %1 = vector.load %arg2[%c0_1, %c0_2] : memref<8x128xf32, #tpu.memory_space<vmem>>, vector<8x128xf32>
    %2 = math.absf %0 : vector<8x128xf32>
    %cst = arith.constant 0.000000e+00 : f32
    %3 = vector.broadcast %cst : f32 to vector<8x128xf32>
    %4 = arith.subf %3, %2 : vector<8x128xf32>
    %5 = math.exp %4 : vector<8x128xf32>
    %cst_3 = arith.constant 0.000000e+00 : f32
    %6 = vector.broadcast %cst_3 : f32 to vector<8x128xf32>
    %7 = arith.maximumf %0, %6 : vector<8x128xf32>
    %8 = arith.mulf %0, %1 : vector<8x128xf32>
    %9 = arith.subf %7, %8 : vector<8x128xf32>
    %10 = math.log1p %5 : vector<8x128xf32>
    %11 = arith.addf %9, %10 : vector<8x128xf32>
    %cst_4 = arith.constant 5.000000e-01 : f32
    %12 = vector.broadcast %cst_4 : f32 to vector<8x128xf32>
    %13 = arith.subf %1, %12 : vector<8x128xf32>
    %14 = arith.mulf %13, %0 : vector<8x128xf32>
    %cst_5 = arith.constant 0.000000e+00 : f32
    %15 = vector.broadcast %cst_5 : f32 to vector<8x128xf32>
    %16 = arith.cmpf ogt, %14, %15 : vector<8x128xf32>
    %cst_6 = arith.constant 1.000000e+00 : f32
    %17 = vector.broadcast %cst_6 : f32 to vector<8x128xf32>
    %18 = arith.select %16, %17, %5 : vector<8x128xi1>, vector<8x128xf32>
    %cst_7 = arith.constant 1.000000e+00 : f32
    %19 = vector.broadcast %cst_7 : f32 to vector<8x128xf32>
    %20 = arith.addf %19, %5 : vector<8x128xf32>
    %21 = tpu.reciprocal %20 {approx = true} : vector<8x128xf32> -> vector<8x128xf32>
    %22 = arith.mulf %20, %21 : vector<8x128xf32>
    %cst_8 = arith.constant 2.000000e+00 : f32
    %23 = vector.broadcast %cst_8 : f32 to vector<8x128xf32>
    %24 = arith.subf %23, %22 : vector<8x128xf32>
    %25 = arith.mulf %21, %24 : vector<8x128xf32>
    %26 = arith.mulf %18, %25 : vector<8x128xf32>
    %cst_9 = arith.constant 1.000000e+00 : f32
    %27 = vector.broadcast %cst_9 : f32 to vector<8x128xf32>
    %28 = arith.subf %27, %26 : vector<8x128xf32>
    %29 = arith.mulf %28, %28 : vector<8x128xf32>
    %30 = arith.mulf %29, %11 : vector<8x128xf32>
    %cst_10 = arith.constant dense<0.000000e+00> : vector<128xf32>
    %31 = vector.multi_reduction <add>, %30, %cst_10 [0] : vector<8x128xf32> to vector<128xf32>
    %c0_11 = arith.constant 0 : index
    %c0_12 = arith.constant 0 : index
    %c0_13 = arith.constant 0 : index
    %32 = vector.load %arg3[%c0_11, %c0_12, %c0_13] : memref<1x4x128xf32, #tpu.memory_space<vmem>>, vector<1x1x128xf32>
    %33 = vector.shape_cast %32 : vector<1x1x128xf32> to vector<128xf32>
    %34 = vector.shape_cast %31 : vector<128xf32> to vector<1x1x128xf32>
    tpu.vector_store %arg3[%c0_11, %c0_12, %c0_13], %34 {strides = array<i32>} : memref<1x4x128xf32, #tpu.memory_space<vmem>>, vector<1x1x128xf32>,
    %cst_14 = arith.constant dense<0.000000e+00> : vector<128xf32>
    %35 = vector.multi_reduction <add>, %11, %cst_14 [0] : vector<8x128xf32> to vector<128xf32>
    %c0_15 = arith.constant 0 : index
    %c1 = arith.constant 1 : index
    %c0_16 = arith.constant 0 : index
    %36 = vector.load %arg3[%c0_15, %c1, %c0_16] : memref<1x4x128xf32, #tpu.memory_space<vmem>>, vector<1x1x128xf32>
    %37 = vector.shape_cast %36 : vector<1x1x128xf32> to vector<128xf32>
    %38 = vector.shape_cast %35 : vector<128xf32> to vector<1x1x128xf32>
    tpu.vector_store %arg3[%c0_15, %c1, %c0_16], %38 {strides = array<i32>} : memref<1x4x128xf32, #tpu.memory_space<vmem>>, vector<1x1x128xf32>,
    %39 = arith.mulf %11, %1 : vector<8x128xf32>
    %cst_17 = arith.constant dense<0.000000e+00> : vector<128xf32>
    %40 = vector.multi_reduction <add>, %39, %cst_17 [0] : vector<8x128xf32> to vector<128xf32>
    %c0_18 = arith.constant 0 : index
    %c2 = arith.constant 2 : index
    %c0_19 = arith.constant 0 : index
    %41 = vector.load %arg3[%c0_18, %c2, %c0_19] : memref<1x4x128xf32, #tpu.memory_space<vmem>>, vector<1x1x128xf32>
    %42 = vector.shape_cast %41 : vector<1x1x128xf32> to vector<128xf32>
    %43 = vector.shape_cast %40 : vector<128xf32> to vector<1x1x128xf32>
    tpu.vector_store %arg3[%c0_18, %c2, %c0_19], %43 {strides = array<i32>} : memref<1x4x128xf32, #tpu.memory_space<vmem>>, vector<1x1x128xf32>,
    %cst_20 = arith.constant dense<0.000000e+00> : vector<128xf32>
    %44 = vector.multi_reduction <add>, %1, %cst_20 [0] : vector<8x128xf32> to vector<128xf32>
    %c0_21 = arith.constant 0 : index
    %c3 = arith.constant 3 : index
    %c0_22 = arith.constant 0 : index
    %45 = vector.load %arg3[%c0_21, %c3, %c0_22] : memref<1x4x128xf32, #tpu.memory_space<vmem>>, vector<1x1x128xf32>
    %46 = vector.shape_cast %45 : vector<1x1x128xf32> to vector<128xf32>
    %47 = vector.shape_cast %44 : vector<128xf32> to vector<1x1x128xf32>
    tpu.vector_store %arg3[%c0_21, %c3, %c0_22], %47 {strides = array<i32>} : memref<1x4x128xf32, #tpu.memory_space<vmem>>, vector<1x1x128xf32>,
    return
  }
  func.func @transform_0(%arg0: i32) -> (i32, i32) {
    %c0_i32 = arith.constant 0 : i32
    %c0_i32_0 = arith.constant 0 : i32
    return %arg0, %c0_i32 : i32, i32
  }
  func.func @transform_1(%arg0: i32) -> (i32, i32) {
    %c0_i32 = arith.constant 0 : i32
    %c0_i32_0 = arith.constant 0 : i32
    return %arg0, %c0_i32 : i32, i32
  }
  func.func @transform_2(%arg0: i32) -> (i32, i32, i32) {
    %c0_i32 = arith.constant 0 : i32
    %c0_i32_0 = arith.constant 0 : i32
    %c0_i32_1 = arith.constant 0 : i32
    return %arg0, %c0_i32, %c0_i32_0 : i32, i32, i32
  }
}

</mosaic_0001>

<bundles_post_ra>
// kernel: focal_bce_npbbce_loss.1
= control target key start
LH: loop header
LB: loop body
LE: loop exit
PB: predicated region body
PF: predicated region fallthrough
CT: control target
= control target key end

     0   :  { %7 = vsyncpa [#allocation3], 0  ;;  %s212_s0 = inlined_call_operand.hbm [shape: f32[8,128], index: 0, kind: input, shape index: {}]   ;;  %s213_s1 = inlined_call_operand.hbm [shape: f32[8,128], index: 1, kind: input, shape index: {}]   ;;  %s214_s2 = inlined_call_operand.vmem [shape: f32[1,4,128], index: 2, kind: output, shape index: {}]  }
   0x1   :  { %8 = vsyncpa [#allocation5], 0  ;;  %s159_s9 = smov [#allocation2]   ;;  %s160_s11 = smov [#allocation4]  }
   0x2   :  { %s15_s10 = sshll.u32 %s159_s9, 4  ;;  %s25_s12 = sshll.u32 %s160_s11, 4  ;;  %s16_s10 = int_to_ptr.vmem [resolvable:$true] %s15_s10  ;;  %s26_s12 = int_to_ptr.vmem [resolvable:$true] %s25_s12 }
   0x3   :  { %s111_s15 = scalar_lea.hbm %s212_s0, 128 }
   0x4   :  { %p112_p0 = scmp.ne.s32.totalorder %s212_s0, %s111_s15  ;;  %p115_p1 = scmp.lt.u32.totalorder %s111_s15, %s212_s0 }
   0x6   :  { %p117_p2 = pnand %p115_p1, %p112_p0 }
   0x8   :  { %120 = shalt.err (!%p117_p2)
}
   0x9   :  { %s121_s20 = scalar_lea.vmem %s16_s10, 128  ;;  %p126_p4 = scmp.lt.s32.totalorder %s16_s10, %s16_s10 }
   0xa   :  { %p122_p3 = scmp.ne.s32.totalorder %s16_s10, %s121_s20  ;;  %p127_p5 = scmp.lt.s32.totalorder %s121_s20, %s121_s20 }
   0xc   :  { %p128_p6 = por %p127_p5, %p126_p4 }
   0xe   :  { %p129_p7 = pnand %p128_p6, %p122_p3 }
  0x10   :  { %132 = shalt.err (!%p129_p7)
}
  0x11   :  { %18 = dma.hbm_to_vmem [thread:$0]  %s212_s0, 128, %s16_s10, [#allocation3]  }
  0x12   :  { %s133_s25 = scalar_lea.hbm %s213_s1, 128 }
  0x13   :  { %p134_p8 = scmp.ne.s32.totalorder %s213_s1, %s133_s25  ;;  %p137_p9 = scmp.lt.u32.totalorder %s133_s25, %s213_s1 }
  0x15   :  { %p139_p10 = pnand %p137_p9, %p134_p8 }
  0x17   :  { %142 = shalt.err (!%p139_p10)
}
  0x18   :  { %s143_s30 = scalar_lea.vmem %s26_s12, 128  ;;  %p148_p12 = scmp.lt.s32.totalorder %s26_s12, %s26_s12 }
  0x19   :  { %p144_p11 = scmp.ne.s32.totalorder %s26_s12, %s143_s30  ;;  %p149_p13 = scmp.lt.s32.totalorder %s143_s30, %s143_s30 }
  0x1b   :  { %p150_p0 = por %p149_p13, %p148_p12 }
  0x1d   :  { %p151_p1 = pnand %p150_p0, %p144_p11 }
  0x1f   :  { %154 = shalt.err (!%p151_p1)
}
  0x20   :  { %28 = dma.hbm_to_vmem [thread:$0]  %s213_s1, 128, %s26_s12, [#allocation5]  }
  0x21   :  { %155 = dma.done.wait [#allocation3], 128  }
  0x22   :  { %156 = vsyncadd [#allocation3], 4294967168 }
  0x23   :  { %157 = dma.done.wait [#allocation5], 128  }
  0x24   :  { %158 = vsyncadd [#allocation5], 4294967168  ;;  %v35_v0 = vld [vmem:[#allocation2] sm:$0xff]  ;;  %v36_v1 = vld [vmem:[#allocation4] sm:$0xff] }
  0x25   :  { %v37_v2 = vand.u32 2147483647, %v35_v0  ;;  %v89_v3 = vrot.slane %v36_v1, 4  ;;  %v102_v14 = vadd.f32 -0.5, %v36_v1  ;;  %v41_v16 = vmax.f32 %v35_v0, 0.0 }
  0x26   :  { %v42_v17 = vmul.f32 %v36_v1, %v35_v0 }
  0x27   :  { %v38_v4 = vsub.f32 0.0, %v37_v2  ;;  %v90_v5 = vadd.f32 %v89_v3, %v36_v1  ;;  %v55_v19 = vmul.f32 %v102_v14, %v35_v0 }
  0x28   :  { %v43_v22 = vsub.f32 %v41_v16, %v42_v17 }
  0x29   :  { %v39_v6 = vmul.f32 1.442695, %v38_v4  ;;  %v91_v7 = vrot.slane %v90_v5, 2  ;;  %vm56_vm1 = vcmp.gt.f32.partialorder %v55_v19, 0.0 }
  0x2b   :  { %105 = vpow2.f32 %v39_v6  ;;  %v92_v8 = vadd.f32 %v91_v7, %v90_v5 }
  0x2d   :  { %v93_v9 = vrot.slane %v92_v8, 1 }
  0x2f   :  { %v94_v10 = vadd.f32 %v93_v9, %v92_v8 }
  0x31   :  { %95 = vst [vmem:[%s214_s2 + $0x3] sm:$0x1] %v94_v10 }
  0x35   :  { %v106_v11 = vpop.eup %105 }
  0x36   :  { %v44_v12 = vadd.f32 1.0, %v106_v11  ;;  %v47_v13 = vmul.f32 -0.5, %v106_v11  ;;  %v50_v18 = vand.u32 2147483647, %v106_v11  ;;  %v57_v29 = vsel %vm56_vm1, 1.0, %v106_v11 }
  0x38   :  { %107 = vlog2.f32 %v44_v12  ;;  %v48_v15 = vadd.f32 1.0, %v47_v13  ;;  %vm51_vm0 = vcmp.lt.f32.partialorder %v50_v18, 0.0004427343 }
  0x39   :  { %109 = vrcp.f32 %v44_v12 }
  0x3a   :  { %v49_v20 = vmul.f32 %v106_v11, %v48_v15 }
  0x42   :  { %v108_v21 = vpop.eup %107 }
  0x43   :  { %v110_v23 = vpop.eup %109  ;;  %v46_v24 = vmul.f32 0.6931472, %v108_v21 }
  0x44   :  { %v60_v25 = vmul.f32 %v110_v23, %v44_v12 }
  0x45   :  { %v52_v26 = vsel %vm51_vm0, %v49_v20, %v46_v24 }
  0x46   :  { %v53_v27 = vadd.f32 %v52_v26, %v43_v22  ;;  %v61_v28 = vsub.f32 2.0, %v60_v25 }
  0x48   :  { %v62_v30 = vmul.f32 %v110_v23, %v61_v28  ;;  %v74_v31 = vrot.slane %v53_v27, 4  ;;  %v81_v32 = vmul.f32 %v53_v27, %v36_v1 }
  0x4a   :  { %v63_v33 = vmul.f32 %v62_v30, %v57_v29  ;;  %v75_v34 = vadd.f32 %v74_v31, %v53_v27  ;;  %v82_v35 = vrot.slane %v81_v32, 4 }
  0x4c   :  { %v64_v36 = vsub.f32 1.0, %v63_v33  ;;  %v76_v37 = vrot.slane %v75_v34, 2  ;;  %v83_v38 = vadd.f32 %v82_v35, %v81_v32 }
  0x4e   :  { %v65_v39 = vmul.f32 %v64_v36, %v64_v36  ;;  %v77_v40 = vadd.f32 %v76_v37, %v75_v34  ;;  %v84_v41 = vrot.slane %v83_v38, 2 }
  0x50   :  { %v66_v42 = vmul.f32 %v65_v39, %v53_v27  ;;  %v78_v43 = vrot.slane %v77_v40, 1  ;;  %v85_v44 = vadd.f32 %v84_v41, %v83_v38 }
  0x52   :  { %v67_v45 = vrot.slane %v66_v42, 4  ;;  %v79_v46 = vadd.f32 %v78_v43, %v77_v40  ;;  %v86_v47 = vrot.slane %v85_v44, 1 }
  0x54   :  { %v68_v48 = vadd.f32 %v67_v45, %v66_v42  ;;  %80 = vst [vmem:[%s214_s2 + $0x1] sm:$0x1] %v79_v46  ;;  %v87_v49 = vadd.f32 %v86_v47, %v85_v44 }
  0x56   :  { %v69_v50 = vrot.slane %v68_v48, 2  ;;  %88 = vst [vmem:[%s214_s2 + $0x2] sm:$0x1] %v87_v49 }
  0x58   :  { %v70_v51 = vadd.f32 %v69_v50, %v68_v48 }
  0x5a   :  { %v71_v52 = vrot.slane %v70_v51, 1 }
  0x5c   :  { %v72_v53 = vadd.f32 %v71_v52, %v70_v51 }
  0x5e   :  { %73 = vst [vmem:[%s214_s2] sm:$0x1] %v72_v53 }
  0x5f   :  { %100 = vsyncpa [#allocation3], 1 }
  0x60   :  { %101 = vsyncpa [#allocation5], 1 }

</bundles_post_ra>
